<compile_context>
chip_gen: v7x
topology: tpu7x:2x2x1
jax: 0.10.0
libtpu: 0.0.40
codegen_flags: <defaults>
</compile_context>

<pallas_src>
import jax
import jax.numpy as jnp
from jax import lax
from jax.experimental import pallas as pl
from jax.experimental.pallas import tpu as pltpu

# ---- config (SwitchTransformersConfig analog, small) ----
BATCH = 2
SEQ = 8
D_MODEL = 32
D_FF = 64
NUM_EXPERTS = 4
EXPERT_CAPACITY = 2          # small enough that the capacity-drop path actually triggers
LANES = 128                  # lane-dense merged output width


# ----------------------------------------------------------------------------
# Fused sparse-MoE kernel: router + capacity mask + stacked experts + scaling
# ----------------------------------------------------------------------------
def moe_kernel(x_ref, wr_ref, wi_ref, wo_ref, expand_ref, out_ref):
    nb, S, D = x_ref.shape                 # batches handled by this grid step
    E = wr_ref.shape[-1]
    EDF = wo_ref.shape[0]                  # E * D_FF
    L = out_ref.shape[-1]                  # 128 (lane-dense slab)
    nt = nb * S                            # tokens in this block

    xf = x_ref[...].reshape(nt, D)         # (nt, D)  leading-dim collapse, no relayout

    # --- top-1 router (argmax on logits; max(softmax) derived algebraically) ---
    logits = jnp.dot(xf, wr_ref[...], preferred_element_type=jnp.float32)   # (nt, E)
    lmax = jnp.max(logits, axis=-1, keepdims=True)
    ez = jnp.exp(logits - lmax)
    max_p = 1.0 / jnp.sum(ez, axis=-1, keepdims=True)   # == max(softmax(logits)), exact

    eiota = lax.broadcasted_iota(jnp.int32, (nt, E), 1)
    routed = jnp.min(jnp.where(logits == lmax, eiota, E),
                     axis=-1, keepdims=True)                      # (nt, 1) first-tie argmax
    one_hot = (eiota == routed).astype(jnp.float32)               # (nt, E)

    # --- expert-capacity mask: inclusive cumsum over the sequence, per batch ---
    # log-step scan: O(nt*E*logS) adds, no (nt,nt) triangular matrix / MXU pass.
    prio = one_hot.reshape(nb, S, E)
    shift = 1
    while shift < S:
        shifted = jnp.concatenate(
            [jnp.zeros((nb, shift, E), jnp.float32), prio[:, :S - shift, :]], axis=1)
        prio = prio + shifted
        shift *= 2
    priority = prio.reshape(nt, E)                                 # inclusive cumsum

    keep_oh = one_hot * (priority <= float(EXPERT_CAPACITY)).astype(jnp.float32)  # (nt, E)
    keep = jnp.sum(keep_oh, axis=-1, keepdims=True)                # (nt, 1) in {0, 1}

    # expert_index = argmax(router_mask)  (0 when token dropped -> all-zero row)
    oh_max = jnp.max(keep_oh, axis=-1, keepdims=True)
    eidx_f = jnp.min(jnp.where(keep_oh == oh_max, eiota, E),
                     axis=-1, keepdims=True).astype(jnp.float32)   # (nt, 1)

    # --- stacked experts: mask non-selected expert column groups, wide GEMM down ---
    h = jnp.maximum(jnp.dot(xf, wi_ref[...],
                            preferred_element_type=jnp.float32), 0.0)          # (nt, EDF)
    # Expand keep_oh over each expert's d_ff group via a 0/1 matmul (MXU has slack here).
    wide = jnp.dot(keep_oh, expand_ref[...],
                   preferred_element_type=jnp.float32)                          # (nt, EDF)
    y = jnp.dot(h * wide, wo_ref[...], preferred_element_type=jnp.float32)      # (nt, D)

    next_states = jnp.where(keep > 0.5, y, xf)                     # clone-with-replacement
    out = max_p * next_states                                      # router-prob scaling

    # --- single lane-dense output slab: [out | logits | expert_index | zero pad] ---
    pad = jnp.zeros((nt, L - (D + E + 1)), jnp.float32)
    slab = jnp.concatenate([out, logits, eidx_f, pad], axis=-1)    # (nt, L)
    out_ref[...] = slab.reshape(nb, S, L)


# ----------------------------------------------------------------------------
# Wrapper
# ----------------------------------------------------------------------------
def _batches_per_block(batch=BATCH, seq=SEQ):
    # Split the grid across v7x's two TensorCores only when each half has enough
    # tokens to fill MXU passes and amortize the ~0.35us grid-step overhead.
    try:
        kind = jax.devices()[0].device_kind.lower()
    except Exception:
        kind = ""
    if "v7" in kind and batch % 2 == 0 and (batch * seq) // 2 >= 256:
        return batch // 2
    return batch


def make_forward(nb):
    assert BATCH % nb == 0
    grid = (BATCH // nb,)
    EDF = NUM_EXPERTS * D_FF

    @jax.jit
    def fwd(x, params):
        B, S, D = x.shape
        # Layout plumbing (outside the kernel): stack experts lane-dense.
        wi_flat = params["wi"].transpose(1, 0, 2).reshape(D, EDF)      # (D, E*D_FF)
        wo_flat = params["woe"].reshape(EDF, D)                        # (E*D_FF, D)
        # 0/1 expansion matrix: expert e -> its d_ff column group (compile-time constant).
        expand = (jnp.arange(EDF)[None, :] // D_FF
                  == jnp.arange(NUM_EXPERTS)[:, None]).astype(jnp.float32)   # (E, E*D_FF)

        slab = pl.pallas_call(
            moe_kernel,
            out_shape=jax.ShapeDtypeStruct((B, S, LANES), jnp.float32),
            grid=grid,
            in_specs=[
                pl.BlockSpec((nb, S, D), lambda i: (i, 0, 0)),
                pl.BlockSpec((D, NUM_EXPERTS), lambda i: (0, 0)),
                pl.BlockSpec((D, EDF), lambda i: (0, 0)),
                pl.BlockSpec((EDF, D), lambda i: (0, 0)),
                pl.BlockSpec((NUM_EXPERTS, EDF), lambda i: (0, 0)),
            ],
            out_specs=pl.BlockSpec((nb, S, LANES), lambda i: (i, 0, 0)),
            compiler_params=pltpu.CompilerParams(dimension_semantics=("parallel",)),
        )(x, params["wr"], wi_flat, wo_flat, expand)

        out = slab[..., :D]
        logits = slab[..., D:D + NUM_EXPERTS]
        eidx = slab[..., D + NUM_EXPERTS].astype(jnp.int32)   # exact small ints in fp32
        return out, (logits, eidx)

    return fwd


# ----------------------------------------------------------------------------
# Pure-JAX reference (mirrors the PyTorch module exactly)
# ----------------------------------------------------------------------------
def ref_forward(x, params):
    P = lax.Precision.HIGHEST
    logits = jnp.matmul(x, params["wr"], precision=P)                    # (B, S, E)
    probs = jax.nn.softmax(logits, axis=-1)
    ei = jnp.argmax(probs, axis=-1)
    oh = jax.nn.one_hot(ei, NUM_EXPERTS)
    prio = jnp.cumsum(oh, axis=1)                                        # inclusive, per batch
    mask = oh * (prio <= EXPERT_CAPACITY)
    rp = jnp.max(probs, axis=-1, keepdims=True)

    nxt = x
    for e in range(NUM_EXPERTS):
        h = jnp.maximum(jnp.matmul(x, params["wi"][e], precision=P), 0.0)
        y = jnp.matmul(h, params["woe"][e], precision=P)
        nxt = jnp.where(mask[..., e:e + 1] > 0, y, nxt)

    out = rp * nxt
    expert_index = jnp.argmax(mask, axis=-1).astype(jnp.int32)
    return out, logits, expert_index


def make_params(key):
    ks = jax.random.split(key, 3)
    s = 0.05
    return {
        "wr": s * jax.random.normal(ks[0], (D_MODEL, NUM_EXPERTS), jnp.float32),
        "wi": s * jax.random.normal(ks[1], (NUM_EXPERTS, D_MODEL, D_FF), jnp.float32),
        "woe": s * jax.random.normal(ks[2], (NUM_EXPERTS, D_FF, D_MODEL), jnp.float32),
    }


if __name__ == "__main__":
    key = jax.random.PRNGKey(0)
    kx, kp = jax.random.split(key)
    x = jax.random.normal(kx, (BATCH, SEQ, D_MODEL), jnp.float32)
    params = make_params(kp)

    fwd = make_forward(_batches_per_block())
    out, (router_logits, expert_index) = fwd(x, params)
    jax.block_until_ready(out)

    ro, rl, ri = ref_forward(x, params)
    assert jnp.allclose(out, ro, rtol=1e-4, atol=1e-4), "hidden mismatch"
    assert jnp.allclose(router_logits, rl, rtol=1e-4, atol=1e-4), "logits mismatch"
    assert jnp.array_equal(expert_index, ri), "expert_index mismatch"

    print("KERNEL_OK")
</pallas_src>

<mosaic_0001>
module attributes {stable_mosaic.version = 11 : i64} {
  func.func @moe_kernel(%arg0: i32, %arg1: memref<2x8x32xf32, #tpu.memory_space<vmem>>, %arg2: memref<32x4xf32, #tpu.memory_space<vmem>>, %arg3: memref<32x256xf32, #tpu.memory_space<vmem>>, %arg4: memref<256x32xf32, #tpu.memory_space<vmem>>, %arg5: memref<4x256xf32, #tpu.memory_space<vmem>>, %arg6: memref<2x8x128xf32, #tpu.memory_space<vmem>>) attributes {dimension_semantics = [#tpu.dimension_semantics<parallel>], iteration_bounds = array<i64: 1>, scalar_prefetch = 0 : i64, scratch_operands = 0 : i64, tpu.core_type = #tpu.core_type<tc>, window_params = [{transform_indices = @transform_0, window_bounds = array<i64: 2, 8, 32>}, {pipeline_mode = #tpu.pipeline_mode<synchronous>, transform_indices = @transform_1, window_bounds = array<i64: 32, 4>}, {pipeline_mode = #tpu.pipeline_mode<synchronous>, transform_indices = @transform_2, window_bounds = array<i64: 32, 256>}, {pipeline_mode = #tpu.pipeline_mode<synchronous>, transform_indices = @transform_3, window_bounds = array<i64: 256, 32>}, {pipeline_mode = #tpu.pipeline_mode<synchronous>, transform_indices = @transform_4, window_bounds = array<i64: 4, 256>}, {transform_indices = @transform_5, window_bounds = array<i64: 2, 8, 128>}]} {
    %c0 = arith.constant 0 : index
    %c0_0 = arith.constant 0 : index
    %c0_1 = arith.constant 0 : index
    %0 = vector.load %arg1[%c0, %c0_0, %c0_1] : memref<2x8x32xf32, #tpu.memory_space<vmem>>, vector<2x8x32xf32>
    %1 = vector.shape_cast %0 : vector<2x8x32xf32> to vector<16x32xf32>
    %c0_2 = arith.constant 0 : index
    %c0_3 = arith.constant 0 : index
    %2 = vector.load %arg2[%c0_2, %c0_3] : memref<32x4xf32, #tpu.memory_space<vmem>>, vector<32x4xf32>
    %cst = arith.constant dense<0.000000e+00> : vector<16x4xf32>
    %3 = tpu.matmul %1, %2, %cst {dimension_numbers = #tpu.dot_dimension_numbers<[1], [0], [0], [1], [0, 0, 1, 1], [], []>} : vector<16x32xf32>, vector<32x4xf32>, vector<16x4xf32> -> vector<16x4xf32>
    %cst_4 = arith.constant dense<0xFF800000> : vector<16xf32>
    %4 = vector.multi_reduction <maximumf>, %3, %cst_4 [1] : vector<16x4xf32> to vector<16xf32>
    %5 = vector.shape_cast %4 : vector<16xf32> to vector<16x1xf32>
    %6 = vector.broadcast %5 : vector<16x1xf32> to vector<16x4xf32>
    %7 = arith.subf %3, %6 : vector<16x4xf32>
    %8 = math.exp %7 : vector<16x4xf32>
    %cst_5 = arith.constant dense<0.000000e+00> : vector<16xf32>
    %9 = vector.multi_reduction <add>, %8, %cst_5 [1] : vector<16x4xf32> to vector<16xf32>
    %10 = vector.shape_cast %9 : vector<16xf32> to vector<16x1xf32>
    %cst_6 = arith.constant 1.000000e+00 : f32
    %11 = vector.broadcast %cst_6 : f32 to vector<16x1xf32>
    %12 = arith.divf %11, %10 : vector<16x1xf32>
    %13 = tpu.iota {dimensions = array<i32: 1>} : vector<16x4xi32>
    %14 = vector.broadcast %5 : vector<16x1xf32> to vector<16x4xf32>
    %15 = arith.cmpf oeq, %3, %14 : vector<16x4xf32>
    %c4_i32 = arith.constant 4 : i32
    %16 = vector.broadcast %c4_i32 : i32 to vector<16x4xi32>
    %17 = arith.select %15, %13, %16 : vector<16x4xi1>, vector<16x4xi32>
    %cst_7 = arith.constant dense<2147483647> : vector<16xi32>
    %18 = vector.multi_reduction <minsi>, %17, %cst_7 [1] : vector<16x4xi32> to vector<16xi32>
    %19 = vector.shape_cast %18 : vector<16xi32> to vector<16x1xi32>
    %20 = vector.broadcast %19 : vector<16x1xi32> to vector<16x4xi32>
    %21 = arith.cmpi eq, %13, %20 : vector<16x4xi32>
    %22 = arith.extui %21 : vector<16x4xi1> to vector<16x4xi32>
    %23 = arith.sitofp %22 : vector<16x4xi32> to vector<16x4xf32>
    %24 = vector.shape_cast %23 : vector<16x4xf32> to vector<2x8x4xf32>
    %cst_8 = arith.constant 0.000000e+00 : f32
    %25 = vector.broadcast %cst_8 : f32 to vector<2x1x4xf32>
    %26 = vector.extract_strided_slice %24 {offsets = [0, 0, 0], sizes = [2, 7, 4], strides = [1, 1, 1]} : vector<2x8x4xf32> to vector<2x7x4xf32>
    %27 = tpu.concatenate %25, %26 in 1 : vector<2x1x4xf32>, vector<2x7x4xf32> -> vector<2x8x4xf32>
    %28 = arith.addf %24, %27 : vector<2x8x4xf32>
    %cst_9 = arith.constant 0.000000e+00 : f32
    %29 = vector.broadcast %cst_9 : f32 to vector<2x2x4xf32>
    %30 = vector.extract_strided_slice %28 {offsets = [0, 0, 0], sizes = [2, 6, 4], strides = [1, 1, 1]} : vector<2x8x4xf32> to vector<2x6x4xf32>
    %31 = tpu.concatenate %29, %30 in 1 : vector<2x2x4xf32>, vector<2x6x4xf32> -> vector<2x8x4xf32>
    %32 = arith.addf %28, %31 : vector<2x8x4xf32>
    %cst_10 = arith.constant 0.000000e+00 : f32
    %33 = vector.broadcast %cst_10 : f32 to vector<2x4x4xf32>
    %34 = vector.extract_strided_slice %32 {offsets = [0, 0, 0], sizes = [2, 4, 4], strides = [1, 1, 1]} : vector<2x8x4xf32> to vector<2x4x4xf32>
    %35 = tpu.concatenate %33, %34 in 1 : vector<2x4x4xf32>, vector<2x4x4xf32> -> vector<2x8x4xf32>
    %36 = arith.addf %32, %35 : vector<2x8x4xf32>
    %37 = vector.shape_cast %36 : vector<2x8x4xf32> to vector<16x4xf32>
    %cst_11 = arith.constant 2.000000e+00 : f32
    %38 = vector.broadcast %cst_11 : f32 to vector<16x4xf32>
    %39 = arith.cmpf ole, %37, %38 : vector<16x4xf32>
    %40 = arith.extui %39 : vector<16x4xi1> to vector<16x4xi32>
    %41 = arith.sitofp %40 : vector<16x4xi32> to vector<16x4xf32>
    %42 = arith.mulf %23, %41 : vector<16x4xf32>
    %cst_12 = arith.constant dense<0.000000e+00> : vector<16xf32>
    %43 = vector.multi_reduction <add>, %42, %cst_12 [1] : vector<16x4xf32> to vector<16xf32>
    %44 = vector.shape_cast %43 : vector<16xf32> to vector<16x1xf32>
    %cst_13 = arith.constant dense<0xFF800000> : vector<16xf32>
    %45 = vector.multi_reduction <maximumf>, %42, %cst_13 [1] : vector<16x4xf32> to vector<16xf32>
    %46 = vector.shape_cast %45 : vector<16xf32> to vector<16x1xf32>
    %47 = vector.broadcast %46 : vector<16x1xf32> to vector<16x4xf32>
    %48 = arith.cmpf oeq, %42, %47 : vector<16x4xf32>
    %c4_i32_14 = arith.constant 4 : i32
    %49 = vector.broadcast %c4_i32_14 : i32 to vector<16x4xi32>
    %50 = arith.select %48, %13, %49 : vector<16x4xi1>, vector<16x4xi32>
    %cst_15 = arith.constant dense<2147483647> : vector<16xi32>
    %51 = vector.multi_reduction <minsi>, %50, %cst_15 [1] : vector<16x4xi32> to vector<16xi32>
    %52 = vector.shape_cast %51 : vector<16xi32> to vector<16x1xi32>
    %53 = arith.sitofp %52 : vector<16x1xi32> to vector<16x1xf32>
    %c0_16 = arith.constant 0 : index
    %c0_17 = arith.constant 0 : index
    %54 = vector.load %arg3[%c0_16, %c0_17] : memref<32x256xf32, #tpu.memory_space<vmem>>, vector<32x256xf32>
    %cst_18 = arith.constant dense<0.000000e+00> : vector<16x256xf32>
    %55 = tpu.matmul %1, %54, %cst_18 {dimension_numbers = #tpu.dot_dimension_numbers<[1], [0], [0], [1], [0, 0, 1, 1], [], []>} : vector<16x32xf32>, vector<32x256xf32>, vector<16x256xf32> -> vector<16x256xf32>
    %cst_19 = arith.constant 0.000000e+00 : f32
    %56 = vector.broadcast %cst_19 : f32 to vector<16x256xf32>
    %57 = arith.maximumf %55, %56 : vector<16x256xf32>
    %c0_20 = arith.constant 0 : index
    %c0_21 = arith.constant 0 : index
    %58 = vector.load %arg5[%c0_20, %c0_21] : memref<4x256xf32, #tpu.memory_space<vmem>>, vector<4x256xf32>
    %cst_22 = arith.constant dense<0.000000e+00> : vector<16x256xf32>
    %59 = tpu.matmul %42, %58, %cst_22 {dimension_numbers = #tpu.dot_dimension_numbers<[1], [0], [0], [1], [0, 0, 1, 1], [], []>} : vector<16x4xf32>, vector<4x256xf32>, vector<16x256xf32> -> vector<16x256xf32>
    %60 = arith.mulf %57, %59 : vector<16x256xf32>
    %c0_23 = arith.constant 0 : index
    %c0_24 = arith.constant 0 : index
    %61 = vector.load %arg4[%c0_23, %c0_24] : memref<256x32xf32, #tpu.memory_space<vmem>>, vector<256x32xf32>
    %cst_25 = arith.constant dense<0.000000e+00> : vector<16x32xf32>
    %62 = tpu.matmul %60, %61, %cst_25 {dimension_numbers = #tpu.dot_dimension_numbers<[1], [0], [0], [1], [0, 0, 1, 1], [], []>} : vector<16x256xf32>, vector<256x32xf32>, vector<16x32xf32> -> vector<16x32xf32>
    %cst_26 = arith.constant 5.000000e-01 : f32
    %63 = vector.broadcast %cst_26 : f32 to vector<16x1xf32>
    %64 = arith.cmpf ogt, %44, %63 : vector<16x1xf32>
    %65 = vector.shape_cast %64 : vector<16x1xi1> to vector<16x1xi1>
    %66 = vector.broadcast %65 : vector<16x1xi1> to vector<16x32xi1>
    %67 = arith.select %66, %62, %1 : vector<16x32xi1>, vector<16x32xf32>
    %68 = vector.broadcast %12 : vector<16x1xf32> to vector<16x32xf32>
    %69 = arith.mulf %68, %67 : vector<16x32xf32>
    %cst_27 = arith.constant 0.000000e+00 : f32
    %70 = vector.broadcast %cst_27 : f32 to vector<16x91xf32>
    %71 = tpu.concatenate %69, %3, %53, %70 in 1 : vector<16x32xf32>, vector<16x4xf32>, vector<16x1xf32>, vector<16x91xf32> -> vector<16x128xf32>
    %72 = vector.shape_cast %71 : vector<16x128xf32> to vector<2x8x128xf32>
    %c0_28 = arith.constant 0 : index
    %c0_29 = arith.constant 0 : index
    %c0_30 = arith.constant 0 : index
    %73 = vector.load %arg6[%c0_28, %c0_29, %c0_30] : memref<2x8x128xf32, #tpu.memory_space<vmem>>, vector<2x8x128xf32>
    tpu.vector_store %arg6[%c0_28, %c0_29, %c0_30], %72 {strides = array<i32>} : memref<2x8x128xf32, #tpu.memory_space<vmem>>, vector<2x8x128xf32>,
    return
  }
  func.func @transform_0(%arg0: i32) -> (i32, i32, i32) {
    %c0_i32 = arith.constant 0 : i32
    %c0_i32_0 = arith.constant 0 : i32
    %c0_i32_1 = arith.constant 0 : i32
    return %arg0, %c0_i32, %c0_i32_0 : i32, i32, i32
  }
  func.func @transform_1(%arg0: i32) -> (i32, i32) {
    %c0_i32 = arith.constant 0 : i32
    %c0_i32_0 = arith.constant 0 : i32
    %c0_i32_1 = arith.constant 0 : i32
    return %c0_i32, %c0_i32_0 : i32, i32
  }
  func.func @transform_2(%arg0: i32) -> (i32, i32) {
    %c0_i32 = arith.constant 0 : i32
    %c0_i32_0 = arith.constant 0 : i32
    %c0_i32_1 = arith.constant 0 : i32
    return %c0_i32, %c0_i32_0 : i32, i32
  }
  func.func @transform_3(%arg0: i32) -> (i32, i32) {
    %c0_i32 = arith.constant 0 : i32
    %c0_i32_0 = arith.constant 0 : i32
    %c0_i32_1 = arith.constant 0 : i32
    return %c0_i32, %c0_i32_0 : i32, i32
  }
  func.func @transform_4(%arg0: i32) -> (i32, i32) {
    %c0_i32 = arith.constant 0 : i32
    %c0_i32_0 = arith.constant 0 : i32
    %c0_i32_1 = arith.constant 0 : i32
    return %c0_i32, %c0_i32_0 : i32, i32
  }
  func.func @transform_5(%arg0: i32) -> (i32, i32, i32) {
    %c0_i32 = arith.constant 0 : i32
    %c0_i32_0 = arith.constant 0 : i32
    %c0_i32_1 = arith.constant 0 : i32
    return %arg0, %c0_i32, %c0_i32_0 : i32, i32, i32
  }
}

</mosaic_0001>

<bundles_post_ra>
// kernel: fwd.1
= control target key start
LH: loop header
LB: loop body
LE: loop exit
PB: predicated region body
PF: predicated region fallthrough
CT: control target
= control target key end

     0   :  { %vm26_vm0 = vcmask 261120   ;;  %vm108_vm1 = vcmask 31744   ;;  %v131_v12 = vlaneseq  ;;  %v710_v25 = vmov 0.0   ;;  %s976_s1 = inlined_call_operand.vmem [shape: f32[32,4], index: 1, kind: input, shape index: {}]   ;;  %s977_s0 = inlined_call_operand.vmem [shape: f32[2,8,32], index: 0, kind: input, shape index: {}]   ;;  %s978_s2 = inlined_call_operand.vmem [shape: f32[32,256], index: 2, kind: input, shape index: {}]   ;;  %s979_s4 = inlined_call_operand.vmem [shape: f32[4,256], index: 4, kind: input, shape index: {}]   ;;  %s980_s3 = inlined_call_operand.vmem [shape: f32[256,32], index: 3, kind: input, shape index: {}]   ;;  %s981_s5 = inlined_call_operand.vmem [shape: f32[2,8,128], index: 5, kind: output, shape index: {}]  }
   0x1   :  { %v22_v0 = vld [vmem:[%s976_s1] sm:$0xff]  ;;  %v23_v1 = vld [vmem:[%s976_s1 + $0x8] sm:$0xff]  ;;  %v24_v2 = vld [vmem:[%s976_s1 + $0x10] sm:$0xff]  ;;  %vm201_vm6 = vcmask 1043456   ;;  %vm179_vm8 = vcmask 1040384   ;;  %vm190_vm10 = vcmask 1041408  }
   0x2   :  { %v651_v3 = vpack.c.bf16 %v23_v1, %v22_v0  ;;  %v25_v4 = vld [vmem:[%s976_s1 + $0x18] sm:$0xff]  ;;  %v757_v5 = vld [vmem:[%s977_s0] sm:$0xff]  ;;  %v764_v7 = vld [vmem:[%s977_s0 + $0x8] sm:$0xff]  ;;  %v776_v13 = vand.u32 127, %v131_v12 }
   0x3   :  { %v655_v6 = vpack.c.bf16 %v25_v4, %v24_v2  ;;  %648 = vmatprep.mubr.msk.f32.mxu0 %vm26_vm0, %v757_v5  ;;  %v263_v34 = vld [vmem:[%s978_s2 + $0x8] sm:$0xff]  ;;  %v265_v35 = vld [vmem:[%s978_s2 + $0x18] sm:$0xff]  ;;  %v262_v37 = vld [vmem:[%s978_s2] sm:$0xff] }
   0x4   :  { %652 = vmatprep.subr.bf16.mxu0 %v651_v3  ;;  %v659_v36 = vpack.c.bf16 %v265_v35, %v263_v34  ;;  %v264_v38 = vld [vmem:[%s978_s2 + $0x10] sm:$0xff]  ;;  %v267_v40 = vld [vmem:[%s978_s2 + $0x28] sm:$0xff]  ;;  %v269_v41 = vld [vmem:[%s978_s2 + $0x38] sm:$0xff] }
   0x5   :  { %654 = vmatpush3.bf16.msra.mxu0 %v651_v3  ;;  %v661_v39 = vpack.c.bf16 %v264_v38, %v262_v37  ;;  %v663_v42 = vpack.c.bf16 %v269_v41, %v267_v40  ;;  %v266_v43 = vld [vmem:[%s978_s2 + $0x20] sm:$0xff]  ;;  %v268_v44 = vld [vmem:[%s978_s2 + $0x30] sm:$0xff]  ;;  %v464_v34 = vld [vmem:[%s980_s3 + $0x98] sm:$0xff] }
   0x6   :  { %656 = vmatprep.subr.bf16.mxu0 %v655_v6  ;;  %v665_v45 = vpack.c.bf16 %v268_v44, %v266_v43  ;;  %v351_v46 = vld [vmem:[%s979_s4] sm:$0xff]  ;;  %v447_v37 = vld [vmem:[%s980_s3 + $0x10] sm:$0xff]  ;;  %v448_v38 = vld [vmem:[%s980_s3 + $0x18] sm:$0xff] }
   0x7   :  { %v353_v47 = vcombine.high %v351_v46, %v351_v46  ;;  %v466_v40 = vld [vmem:[%s980_s3 + $0xa8] sm:$0xff]  ;;  %v673_v41 = vpack.c.bf16 %v448_v38, %v447_v37  ;;  %v449_v43 = vld [vmem:[%s980_s3 + $0x20] sm:$0xff] }
   0x8   :  { %v450_v44 = vld [vmem:[%s980_s3 + $0x28] sm:$0xff] }
   0x9   :  { %658 = vmatpush3.bf16.msra.mxu0 %v655_v6 }
   0xa   :  { %660 = vmatprep.subr.bf16.mxu0 %v659_v36 }
   0xc   :  { %649 = vmatmul.mubr.msk.f32.vlgmr.msra.gmra.mrb[0].mxu0 %vm26_vm0, %v764_v7 }
   0xd   :  { %334 = vmatprep.mubr.f32.mxu0 %v710_v25  ;;  %662 = vmatpush1.bf16.msra.mxu0 %v661_v39  ;;  %v465_v39 = vld [vmem:[%s980_s3 + $0xa0] sm:$0xff] }
   0xe   :  { %664 = vmatprep.subr.bf16.mxu0 %v663_v42  ;;  %v675_v42 = vpack.c.bf16 %v466_v40, %v465_v39 }
  0x11   :  { %666 = vmatpush1.bf16.msra.mxu0 %v665_v45  ;;  %v467_v45 = vld [vmem:[%s980_s3 + $0xb0] sm:$0xff] }
  0x12   :  { %592 = vmatprep.subr.msk.mxu0 %vm201_vm6, %v353_v47  ;;  %v677_v47 = vpack.c.bf16 %v450_v44, %v449_v43 }
  0x14   :  { %590 = vmatmul.mubr.msk.f32.vlgmr.msra.gmra.mrb[2].mxu0 %vm26_vm0, %v757_v5 }
  0x15   :  { %340 = vmatprep.mubr.f32.mxu0 %v710_v25  ;;  %593 = vmatpush1.msk.msra.mxu0 %vm201_vm6, %v351_v46  ;;  %v468_v46 = vld [vmem:[%s980_s3 + $0xb8] sm:$0xff] }
  0x18   :  { %591 = vmatmul.mubr.msk.f32.gmra.mrb[4].mxu0 %vm26_vm0, %v764_v7 }
  0x19   :  { %428 = vmatprep.mubr.f32.mxu0 %v710_v25 }
  0xdf   :  { %v768_v8 = vpop.f32.mrb[0].mxu0 }
  0xe0   :  { %v770_v9 = vpop.f32.mrb[1].mxu0  ;;  %v112_v11 = vsel %vm108_vm1, %v768_v8, -inf }
  0xe1   :  { %v109_v10 = vsel %vm108_vm1, %v770_v9, -inf }
  0xe2   :  { %110 = vmax.xlane.f32.xlu0 %v109_v10 }
  0xe6   :  { %113 = vmax.xlane.f32.xlu0 %v112_v11 }
 0x16f   :  { %v778_v14 = vpop.xlane.xlu0 %110 }
 0x170   :  { %v115_v15 = vsub.f32 %v770_v9, %v778_v14  ;;  %vm133_vm2 = vcmp.eq.f32.partialorder %v770_v9, %v778_v14 }
 0x171   :  { %v135_v16 = vsel %vm133_vm2, %v776_v13, 4 }
 0x172   :  { %v137_v17 = vsel %vm108_vm1, %v135_v16, 2147483647 }
 0x173   :  { %v786_v18 = vpop.xlane.xlu0 %113  ;;  %v139_v19 = vshra.s32 %v137_v17, 16  ;;  %v138_v26 = vand.u32 65535, %v137_v17 }
 0x174   :  { %vm134_vm3 = vcmp.eq.f32.partialorder %v768_v8, %v786_v18 }
 0x175   :  { %v136_v20 = vsel %vm134_vm3, %v776_v13, 4  ;;  %v141_v21 = vcvt.s32.f32 %v139_v19  ;;  %v140_v28 = vcvt.s32.f32 %v138_v26 }
 0x176   :  { %v152_v22 = vsel %vm108_vm1, %v136_v20, 2147483647 }
 0x177   :  { %142 = vmin.xlane.f32.xlu1 %v141_v21  ;;  %v154_v23 = vshra.s32 %v152_v22, 16  ;;  %v153_v29 = vand.u32 65535, %v152_v22 }
 0x179   :  { %v156_v24 = vcvt.s32.f32 %v154_v23  ;;  %v155_v32 = vcvt.s32.f32 %v153_v29  ;;  %v461_v29 = vld [vmem:[%s980_s3 + $0x80] sm:$0xff] }
 0x17b   :  { %157 = vmin.xlane.f32.xlu1 %v156_v24 }
 0x204   :  { %v143_v27 = vpop.xlane.xlu1 %142 }
 0x205   :  { %vm144_vm4 = vcmp.eq.f32.partialorder %v141_v21, %v143_v27  ;;  %v149_v48 = vcvt.f32.s32 %v143_v27 }
 0x206   :  { %v145_v30 = vsel %vm144_vm4, %v140_v28, inf  ;;  %vm572_vm4 = vcmask 293888  }
 0x207   :  { %146 = vmin.xlane.f32.xlu0 %v145_v30  ;;  %v150_v50 = vshll.u32 %v149_v48, 16  ;;  %v462_v30 = vld [vmem:[%s980_s3 + $0x88] sm:$0xff]  ;;  %v679_v48 = vpack.c.bf16 %v468_v46, %v467_v45 }
 0x208   :  { %v158_v31 = vpop.xlane.xlu1 %157 }
 0x209   :  { %vm159_vm5 = vcmp.eq.f32.partialorder %v156_v24, %v158_v31  ;;  %v164_v51 = vcvt.f32.s32 %v158_v31  ;;  %v667_v31 = vpack.c.bf16 %v462_v30, %v461_v29 }
 0x20a   :  { %v160_v33 = vsel %vm159_vm5, %v155_v32, inf  ;;  %v446_v32 = vld [vmem:[%s980_s3 + $0x8] sm:$0xff]  ;;  %vm575_vm5 = vcmask 302080  }
 0x20b   :  { %161 = vmin.xlane.f32.xlu1 %v160_v33  ;;  %v165_v55 = vshll.u32 %v164_v51, 16  ;;  %v463_v33 = vld [vmem:[%s980_s3 + $0x90] sm:$0xff]  ;;  %668 = vmatprep.subr.bf16.mxu1 %v667_v31  ;;  %v469_v51 = vld [vmem:[%s980_s3 + $0xc0] sm:$0xff] }
 0x20c   :  { %v671_v36 = vpack.c.bf16 %v464_v34, %v463_v33 }
 0x294   :  { %v147_v49 = vpop.xlane.xlu0 %146 }
 0x295   :  { %v148_v52 = vcvt.f32.s32 %v147_v49  ;;  %v451_v49 = vld [vmem:[%s980_s3 + $0x30] sm:$0xff] }
 0x297   :  { %v151_v53 = vadd.s32 %v150_v50, %v148_v52  ;;  %v452_v50 = vld [vmem:[%s980_s3 + $0x38] sm:$0xff]  ;;  %v470_v52 = vld [vmem:[%s980_s3 + $0xc8] sm:$0xff] }
 0x298   :  { %v162_v54 = vpop.xlane.xlu1 %161 }
 0x299   :  { %vm167_vm7 = vcmp.eq.s32.totalorder %v776_v13, %v151_v53  ;;  %v163_v56 = vcvt.f32.s32 %v162_v54  ;;  %v681_v53 = vpack.c.bf16 %v452_v50, %v451_v49  ;;  %v683_v54 = vpack.c.bf16 %v470_v52, %v469_v51 }
 0x29a   :  { %v586_v57 = vsel %vm167_vm7, 1.0, %v710_v25 }
 0x29b   :  { %v175_v58 = vrot.slane %v586_v57, 7  ;;  %v166_v59 = vadd.s32 %v165_v55, %v163_v56  ;;  %v453_v55 = vld [vmem:[%s980_s3 + $0x40] sm:$0xff]  ;;  %v454_v56 = vld [vmem:[%s980_s3 + $0x48] sm:$0xff] }
 0x29d   :  { %v180_v60 = vsel %vm179_vm8, 0.0, %v175_v58  ;;  %vm168_vm9 = vcmp.eq.s32.totalorder %v776_v13, %v166_v59  ;;  %v472_v58 = vld [vmem:[%s980_s3 + $0xd8] sm:$0xff]  ;;  %v685_v59 = vpack.c.bf16 %v454_v56, %v453_v55 }
 0x29e   :  { %v182_v61 = vadd.f32 %v586_v57, %v180_v60  ;;  %v587_v62 = vsel %vm168_vm9, 1.0, %v710_v25 }
 0x29f   :  { %v176_v63 = vrot.slane %v587_v62, 7 }
 0x2a0   :  { %v186_v0 = vrot.slane %v182_v61, 6 }
 0x2a1   :  { %v181_v1 = vsel %vm179_vm8, 0.0, %v176_v63  ;;  %v473_v63 = vld [vmem:[%s980_s3 + $0xe0] sm:$0xff] }
 0x2a2   :  { %v191_v2 = vsel %vm190_vm10, 0.0, %v186_v0  ;;  %v183_v3 = vadd.f32 %v587_v62, %v181_v1  ;;  %v474_v0 = vld [vmem:[%s980_s3 + $0xe8] sm:$0xff] }
 0x2a3   :  { %v193_v4 = vadd.f32 %v191_v2, %v182_v61  ;;  %v455_v61 = vld [vmem:[%s980_s3 + $0x50] sm:$0xff]  ;;  %v691_v2 = vpack.c.bf16 %v474_v0, %v473_v63 }
 0x2a4   :  { %v187_v6 = vrot.slane %v183_v3, 6 }
 0x2a5   :  { %v197_v10 = vrot.slane %v193_v4, 4 }
 0x2a6   :  { %v192_v11 = vsel %vm190_vm10, 0.0, %v187_v6 }
 0x2a7   :  { %v194_v12 = vadd.f32 %v192_v11, %v183_v3  ;;  %v202_v16 = vsel %vm201_vm6, 0.0, %v197_v10  ;;  %v457_v3 = vld [vmem:[%s980_s3 + $0x60] sm:$0xff]  ;;  %v336_v10 = vpop.f32.mrb[2].mxu0 }
 0x2a8   :  { %v204_v17 = vadd.f32 %v202_v16, %v193_v4  ;;  %v458_v4 = vld [vmem:[%s980_s3 + $0x68] sm:$0xff]  ;;  %v338_v11 = vpop.f32.mrb[3].mxu0 }
 0x2a9   :  { %v198_v19 = vrot.slane %v194_v12, 4  ;;  %v693_v6 = vpack.c.bf16 %v458_v4, %v457_v3 }
 0x2aa   :  { %vm206_vm11 = vcmp.le.f32.partialorder %v204_v17, 2.0  ;;  %v475_v17 = vld [vmem:[%s980_s3 + $0xf0] sm:$0xff] }
 0x2ab   :  { %v203_v20 = vsel %vm201_vm6, 0.0, %v198_v19  ;;  %v588_v21 = vsel %vm206_vm11, 1.0, %v710_v25  ;;  %v476_v19 = vld [vmem:[%s980_s3 + $0xf8] sm:$0xff] }
 0x2ac   :  { %v205_v22 = vadd.f32 %v203_v20, %v194_v12  ;;  %v835_v23 = vmul.f32 %v588_v21, %v586_v57  ;;  %v471_v57 = vld [vmem:[%s980_s3 + $0xd0] sm:$0xff]  ;;  %v342_v12 = vpop.f32.mrb[4].mxu0  ;;  %v695_v20 = vpack.c.bf16 %v476_v19, %v475_v17 }
 0x2ad   :  { %v687_v60 = vpack.c.bf16 %v472_v58, %v471_v57  ;;  %v344_v16 = vpop.f32.mrb[5].mxu0  ;;  %v459_v21 = vld [vmem:[%s980_s3 + $0x70] sm:$0xff]  ;;  %v349_v44 = vmax.f32 %v342_v12, 0.0 }
 0x2ae   :  { %vm207_vm12 = vcmp.le.f32.partialorder %v205_v22, 2.0  ;;  %594 = vmatmul.mubr.msk.f32.vlgmr.msra.gmra.mrb[6].mxu0 %vm108_vm1, %v835_v23  ;;  %v220_v24 = vsel %vm108_vm1, %v835_v23, -inf  ;;  %v460_v22 = vld [vmem:[%s980_s3 + $0x78] sm:$0xff]  ;;  %v214_v40 = vsel %vm108_vm1, %v835_v23, 0.0 }
 0x2af   :  { %221 = vmax.xlane.f32.xlu0 %v220_v24  ;;  %434 = vmatprep.mubr.f32.mxu0 %v710_v25  ;;  %v589_v26 = vsel %vm207_vm12, 1.0, %v710_v25  ;;  %v445_v25 = vld [vmem:[%s980_s3] sm:$0xff]  ;;  %v697_v24 = vpack.c.bf16 %v460_v22, %v459_v21 }
 0x2b0   :  { %v843_v27 = vmul.f32 %v589_v26, %v587_v62  ;;  %v669_v35 = vpack.c.bf16 %v446_v32, %v445_v25  ;;  %v456_v62 = vld [vmem:[%s980_s3 + $0x58] sm:$0xff]  ;;  %v117_v26 = vmul.f32 1.442695, %v115_v15  ;;  %s711_s3 = smov 32  }
 0x2b1   :  { %v689_v1 = vpack.c.bf16 %v456_v62, %v455_v61 }
 0x2b2   :  { %595 = vmatmul.mubr.msk.f32.gmra.mrb[8].mxu0 %vm108_vm1, %v843_v27  ;;  %v223_v28 = vsel %vm108_vm1, %v843_v27, -inf  ;;  %670 = vmatpush3.bf16.msra.mxu1 %v669_v35  ;;  %702 = vpow2.f32 %v117_v26 }
 0x2b3   :  { %224 = vmax.xlane.f32.xlu1 %v223_v28  ;;  %672 = vmatprep.subr.bf16.mxu1 %v671_v36  ;;  %v116_v28 = vsub.f32 %v768_v8, %v786_v18 }
 0x2b5   :  { %v119_v29 = vmul.f32 1.442695, %v116_v28 }
 0x2b6   :  { %674 = vmatpush3.bf16.msra.mxu1 %v673_v41  ;;  %v347_v41 = vmax.f32 %v336_v10, 0.0 }
 0x2b7   :  { %676 = vmatprep.subr.bf16.mxu1 %v675_v42  ;;  %704 = vpow2.f32 %v119_v29  ;;  %v348_v42 = vmax.f32 %v338_v11, 0.0 }
 0x2ba   :  { %678 = vmatpush3.bf16.msra.mxu1 %v677_v47  ;;  %v350_v47 = vmax.f32 %v344_v16, 0.0 }
 0x2bb   :  { %680 = vmatprep.subr.bf16.mxu1 %v679_v48 }
 0x2bc   :  { %v703_v18 = vpop.eup %702 }
 0x2bd   :  { %v121_v37 = vsel %vm108_vm1, %v703_v18, 0.0 }
 0x2be   :  { %682 = vmatpush3.bf16.msra.mxu1 %v681_v53 }
 0x2bf   :  { %684 = vmatprep.subr.bf16.mxu1 %v683_v54 }
 0x2c1   :  { %v705_v38 = vpop.eup %704 }
 0x2c2   :  { %686 = vmatpush3.bf16.msra.mxu1 %v685_v59  ;;  %v124_v39 = vsel %vm108_vm1, %v705_v38, 0.0 }
 0x2c3   :  { %688 = vmatprep.subr.bf16.mxu1 %v687_v60 }
 0x2c6   :  { %690 = vmatpush3.bf16.msra.mxu1 %v689_v1 }
 0x2c7   :  { %692 = vmatprep.subr.bf16.mxu1 %v691_v2 }
 0x2ca   :  { %694 = vmatpush3.bf16.msra.mxu1 %v693_v6 }
 0x2cb   :  { %696 = vmatprep.subr.bf16.mxu1 %v695_v20 }
 0x2ce   :  { %698 = vmatpush3.bf16.msra.mxu1 %v697_v24 }
 0x33c   :  { %v222_v30 = vpop.xlane.xlu0 %221 }
 0x33d   :  { %vm226_vm13 = vcmp.eq.f32.partialorder %v835_v23, %v222_v30 }
 0x33e   :  { %v228_v25 = vsel %vm226_vm13, %v776_v13, 4 }
 0x33f   :  { %v230_v31 = vsel %vm108_vm1, %v228_v25, 2147483647 }
 0x340   :  { %v225_v32 = vpop.xlane.xlu1 %224  ;;  %v232_v33 = vshra.s32 %v230_v31, 16  ;;  %v231_v52 = vand.u32 65535, %v230_v31 }
 0x341   :  { %vm227_vm14 = vcmp.eq.f32.partialorder %v843_v27, %v225_v32 }
 0x342   :  { %v229_v14 = vsel %vm227_vm14, %v776_v13, 4  ;;  %v234_v15 = vcvt.s32.f32 %v232_v33  ;;  %v217_v13 = vsel %vm108_vm1, %v843_v27, 0.0  ;;  %v233_v27 = vcvt.s32.f32 %v231_v52 }
 0x343   :  { %v245_v34 = vsel %vm108_vm1, %v229_v14, 2147483647 }
 0x344   :  { %235 = vmin.xlane.f32.xlu0 %v234_v15  ;;  %v247_v35 = vshra.s32 %v245_v34, 16  ;;  %v246_v54 = vand.u32 65535, %v245_v34 }
 0x346   :  { %v249_v36 = vcvt.s32.f32 %v247_v35  ;;  %v248_v57 = vcvt.s32.f32 %v246_v54 }
 0x348   :  { %250 = vmin.xlane.f32.xlu1 %v249_v36  ;;  %122 = vadd.xlane.f32.xlu0 %v121_v37 }
 0x34c   :  { %125 = vadd.xlane.f32.xlu1 %v124_v39  ;;  %215 = vadd.xlane.f32.xlu0 %v214_v40 }
 0x350   :  { %218 = vadd.xlane.f32.xlu1 %v217_v13 }
 0x381   :  { %v430_v43 = vpop.f32.mrb[6].mxu0 }
 0x382   :  { %v441_v45 = vmul.f32 %v430_v43, %v347_v41  ;;  %v432_v46 = vpop.f32.mrb[7].mxu0 }
 0x383   :  { %v442_v48 = vmul.f32 %v432_v46, %v348_v42 }
 0x385   :  { %v436_v49 = vpop.f32.mrb[8].mxu0  ;;  %541 = vmatprep.mubr.f32.mxu1 %v442_v48 }
 0x386   :  { %v443_v50 = vmul.f32 %v436_v49, %v349_v44  ;;  %v438_v51 = vpop.f32.mrb[9].mxu0  ;;  %542 = vmatmul.mubr.f32.vlgmr.msra.gmra.mrb[0].mxu1 %v441_v45 }
 0x387   :  { %v444_v23 = vmul.f32 %v438_v51, %v350_v47 }
 0x389   :  { %546 = vmatprep.mubr.f32.mxu1 %v444_v23 }
 0x38a   :  { %547 = vmatmul.mubr.f32.gmra.mrb[2].mxu1 %v443_v50 }
 0x3d1   :  { %v236_v53 = vpop.xlane.xlu0 %235 }
 0x3d2   :  { %vm237_vm15 = vcmp.eq.f32.partialorder %v234_v15, %v236_v53  ;;  %v242_v2 = vcvt.f32.s32 %v236_v53 }
 0x3d3   :  { %v238_v55 = vsel %vm237_vm15, %v233_v27, inf }
 0x3d4   :  { %239 = vmin.xlane.f32.xlu0 %v238_v55  ;;  %v243_v12 = vshll.u32 %v242_v2, 16 }
 0x3d5   :  { %v251_v56 = vpop.xlane.xlu1 %250  ;;  %v123_v59 = vpop.xlane.xlu0 %122 }
 0x3d6   :  { %vm252_vm1 = vcmp.eq.f32.partialorder %v249_v36, %v251_v56  ;;  %706 = vrcp.f32 %v123_v59  ;;  %v257_v6 = vcvt.f32.s32 %v251_v56 }
 0x3d7   :  { %v253_v58 = vsel %vm252_vm1, %v248_v57, inf }
 0x3d8   :  { %254 = vmin.xlane.f32.xlu1 %v253_v58  ;;  %v258_v20 = vshll.u32 %v257_v6, 16 }
 0x3d9   :  { %v126_v61 = vpop.xlane.xlu1 %125  ;;  %v216_v0 = vpop.xlane.xlu0 %215 }
 0x3da   :  { %708 = vrcp.f32 %v126_v61  ;;  %vm552_vm2 = vcmp.gt.f32.partialorder %v216_v0, 0.5 }
 0x3dd   :  { %v219_v10 = vpop.xlane.xlu1 %218 }
 0x3de   :  { %vm553_vm3 = vcmp.gt.f32.partialorder %v219_v10, 0.5 }
 0x3e0   :  { %v707_v16 = vpop.eup %706 }
 0x3e4   :  { %v709_v30 = vpop.eup %708 }
 0x3e9   :  { %566 = vrot.lane.b32.xlu1 %v768_v8, %s711_s3 }
 0x3ea   :  { %564 = vrot.lane.b32.xlu0 %v770_v9, %s711_s3 }
 0x459   :  { %v634_v60 = vpop.f32.mrb[0].mxu1 }
 0x45a   :  { %v635_v62 = vpop.f32.mrb[1].mxu1 }
 0x45b   :  { %v636_v63 = vadd.f32 %v635_v62, %v634_v60 }
 0x45d   :  { %v637_v1 = vpop.f32.mrb[2].mxu1  ;;  %v558_v11 = vsel %vm552_vm2, %v636_v63, %v757_v5 }
 0x45e   :  { %v638_v3 = vpop.f32.mrb[3].mxu1  ;;  %v560_v17 = vmul.f32 %v707_v16, %v558_v11 }
 0x45f   :  { %v639_v4 = vadd.f32 %v638_v3, %v637_v1 }
 0x461   :  { %v240_v8 = vpop.xlane.xlu0 %239  ;;  %v559_v21 = vsel %vm553_vm3, %v639_v4, %v764_v7 }
 0x462   :  { %v241_v9 = vcvt.f32.s32 %v240_v8  ;;  %v561_v5 = vmul.f32 %v709_v30, %v559_v21 }
 0x464   :  { %v244_v19 = vadd.s32 %v243_v12, %v241_v9 }
 0x465   :  { %v255_v22 = vpop.xlane.xlu1 %254  ;;  %v565_v24 = vpop.permute.xlu0 %564 }
 0x466   :  { %v260_v26 = vcvt.s32.f32 %v244_v19  ;;  %v256_v28 = vcvt.f32.s32 %v255_v22  ;;  %v570_v29 = vsel %vm26_vm0, %v560_v17, %v565_v24 }
 0x468   :  { %v259_v25 = vadd.s32 %v258_v20, %v256_v28  ;;  %v573_v31 = vsel %vm572_vm4, %v570_v29, %v260_v26 }
 0x469   :  { %v576_v32 = vsel %vm575_vm5, %v573_v31, 0.0  ;;  %v567_v33 = vpop.permute.xlu1 %566 }
 0x46a   :  { %v261_v14 = vcvt.s32.f32 %v259_v25  ;;  %578 = vst [vmem:[%s981_s5] sm:$0xff] %v576_v32  ;;  %v571_v7 = vsel %vm26_vm0, %v561_v5, %v567_v33 }
 0x46c   :  { %v574_v15 = vsel %vm572_vm4, %v571_v7, %v261_v14 }
 0x46d   :  { %v577_v34 = vsel %vm575_vm5, %v574_v15, 0.0 }
 0x46e   :  { %579 = vst [vmem:[%s981_s5 + $0x8] sm:$0xff] %v577_v34 }

</bundles_post_ra>
